<compile_context>
chip_gen: v7x
topology: tpu7x:2x2x1
jax: 0.10.0
libtpu: 0.0.40
codegen_flags: <defaults>
</compile_context>

<pallas_src>
import jax
import jax.numpy as jnp
from jax.experimental import pallas as pl
from jax.experimental.pallas import tpu as pltpu


def _round_up(x, m):
    return ((x + m - 1) // m) * m


# ---------------------------------------------------------------------------
# Kernels
# ---------------------------------------------------------------------------
def _linear_kernel_single_k(x1_ref, x2_ref, w1_ref, w2_ref, b_ref, o_ref):
    """Whole reduction in one tile: no scratch, no phases."""
    acc = jnp.dot(x1_ref[...], w1_ref[...], preferred_element_type=jnp.float32)
    acc += jnp.dot(x2_ref[...], w2_ref[...], preferred_element_type=jnp.float32)
    acc += b_ref[...].astype(jnp.float32)  # (1, tn) broadcasts over rows
    o_ref[...] = acc.astype(o_ref.dtype)


def _linear_kernel_tiled_k(x1_ref, x2_ref, w1_ref, w2_ref, b_ref, o_ref, acc_ref):
    """Tiled reduction: grid (M, N, K), K last; f32 VMEM accumulator."""
    k = pl.program_id(2)

    @pl.when(k == 0)
    def _init():
        # Fold the bias into the accumulator initialization.
        acc_ref[...] = jnp.broadcast_to(
            b_ref[...].astype(jnp.float32), acc_ref.shape
        )

    acc_ref[...] += jnp.dot(
        x1_ref[...], w1_ref[...], preferred_element_type=jnp.float32
    )
    acc_ref[...] += jnp.dot(
        x2_ref[...], w2_ref[...], preferred_element_type=jnp.float32
    )

    @pl.when(k == pl.num_programs(2) - 1)
    def _finalize():
        o_ref[...] = acc_ref[...].astype(o_ref.dtype)


# ---------------------------------------------------------------------------
# One-time parameter preparation (outside the per-call hot path)
# ---------------------------------------------------------------------------
def prepare_linear_params(weight, bias, param_dtype=None):
    """weight: (num_classes, 2*C) PyTorch nn.Linear layout; bias: (num_classes,).

    param_dtype: optionally cast weights (e.g. jnp.bfloat16 on v6e/v7x for
    ~2-3x MXU throughput); accumulation inside the kernel stays f32 either way.
    """
    N, K2 = weight.shape
    C = K2 // 2
    assert 2 * C == K2, "weight in_features must be 2 * input_channels"

    w_t = weight.T            # (2C, N) -- done ONCE here, never per forward call
    w1 = w_t[:C]              # (C, N): multiplies x1
    w2 = w_t[C:]              # (C, N): multiplies x2

    C_pad = _round_up(C, 128)  # lane dim of x tiles / sublane dim of w tiles
    N_pad = _round_up(N, 128)  # lane-dense output

    def pad2d(a, rows, cols):
        return jnp.pad(a, ((0, rows - a.shape[0]), (0, cols - a.shape[1])))

    w1 = pad2d(w1, C_pad, N_pad)
    w2 = pad2d(w2, C_pad, N_pad)
    b2d = jnp.pad(bias.reshape(1, -1), ((0, 0), (0, N_pad - N)))

    if param_dtype is not None:
        w1 = w1.astype(param_dtype)
        w2 = w2.astype(param_dtype)

    return {"w1": w1, "w2": w2, "bias": b2d, "num_classes": N, "channels": C}


# ---------------------------------------------------------------------------
# Forward
# ---------------------------------------------------------------------------
def linear_module_forward(x1, x2, params):
    """Equivalent of Linear_Module.forward(x1, x2).

    x1, x2: (B, C) activations.  Returns (B, num_classes).
    """
    w1, w2, b2d = params["w1"], params["w2"], params["bias"]
    N = params["num_classes"]
    C = params["channels"]
    C_pad, N_pad = w1.shape

    B = x1.shape[0]
    out_dtype = x1.dtype

    # Cast activations to the (possibly bf16) param dtype at the boundary.
    if x1.dtype != w1.dtype:
        x1 = x1.astype(w1.dtype)
        x2 = x2.astype(w1.dtype)

    # Tile sizes — double-buffered blocks stay well under the default
    # scoped-VMEM window on all generations (v5e 16MiB, v6e/v7x 32MiB).
    B8 = _round_up(B, 8)                       # sublane-dense batch
    tm = B8 if B8 <= 256 else 256
    B_pad = _round_up(B, tm)
    tn = 256 if N_pad % 256 == 0 else 128

    def pad_x(x):
        if B_pad == B and C_pad == C:
            return x
        return jnp.pad(x, ((0, B_pad - B), (0, C_pad - C)))

    x1p = pad_x(x1)
    x2p = pad_x(x2)

    itemsize = jnp.dtype(x1p.dtype).itemsize
    cost = pl.CostEstimate(
        flops=2 * B_pad * (2 * C_pad) * N_pad,
        transcendentals=0,
        bytes_accessed=(
            (x1p.size + x2p.size) * itemsize
            + (w1.size + w2.size) * jnp.dtype(w1.dtype).itemsize
            + b2d.size * jnp.dtype(b2d.dtype).itemsize
            + B_pad * N_pad * jnp.dtype(out_dtype).itemsize
        ),
    )

    if C_pad <= 512:
        # -------- fast path: whole K in one tile, 2-D grid, no scratch --------
        grid = (B_pad // tm, N_pad // tn)
        out = pl.pallas_call(
            _linear_kernel_single_k,
            out_shape=jax.ShapeDtypeStruct((B_pad, N_pad), out_dtype),
            grid_spec=pltpu.PrefetchScalarGridSpec(
                num_scalar_prefetch=0,
                grid=grid,
                in_specs=[
                    pl.BlockSpec((tm, C_pad), lambda i, j: (i, 0)),  # x1
                    pl.BlockSpec((tm, C_pad), lambda i, j: (i, 0)),  # x2
                    pl.BlockSpec((C_pad, tn), lambda i, j: (0, j)),  # W[:C]
                    pl.BlockSpec((C_pad, tn), lambda i, j: (0, j)),  # W[C:]
                    pl.BlockSpec((1, tn), lambda i, j: (0, j)),      # bias
                ],
                out_specs=pl.BlockSpec((tm, tn), lambda i, j: (i, j)),
            ),
            compiler_params=pltpu.CompilerParams(
                dimension_semantics=("parallel", "parallel"),
            ),
            cost_estimate=cost,
        )(x1p, x2p, w1, w2, b2d)
    else:
        # -------- general path: tiled K reduction with f32 accumulator --------
        tk = 512 if C_pad % 512 == 0 else (256 if C_pad % 256 == 0 else 128)
        grid = (B_pad // tm, N_pad // tn, C_pad // tk)
        out = pl.pallas_call(
            _linear_kernel_tiled_k,
            out_shape=jax.ShapeDtypeStruct((B_pad, N_pad), out_dtype),
            grid_spec=pltpu.PrefetchScalarGridSpec(
                num_scalar_prefetch=0,
                grid=grid,
                in_specs=[
                    pl.BlockSpec((tm, tk), lambda i, j, k: (i, k)),   # x1 tile
                    pl.BlockSpec((tm, tk), lambda i, j, k: (i, k)),   # x2 tile
                    pl.BlockSpec((tk, tn), lambda i, j, k: (k, j)),   # W[:C] tile
                    pl.BlockSpec((tk, tn), lambda i, j, k: (k, j)),   # W[C:] tile
                    pl.BlockSpec((1, tn), lambda i, j, k: (0, j)),    # bias tile
                ],
                out_specs=pl.BlockSpec((tm, tn), lambda i, j, k: (i, j)),
                scratch_shapes=[pltpu.VMEM((tm, tn), jnp.float32)],
            ),
            compiler_params=pltpu.CompilerParams(
                dimension_semantics=("parallel", "parallel", "arbitrary"),
            ),
            cost_estimate=cost,
        )(x1p, x2p, w1, w2, b2d)

    # Slice the padding back off (rows padded to sublanes, cols to lanes).
    return out[:B, :N]


if __name__ == "__main__":
    num_classes = 8
    input_channels = 128
    batch = 2

    key = jax.random.PRNGKey(0)
    k1, k2, kw = jax.random.split(key, 3)

    # Deterministic inputs.
    x1 = jax.random.normal(k1, (batch, input_channels), dtype=jnp.float32)
    x2 = jax.random.normal(k2, (batch, input_channels), dtype=jnp.float32)

    # Deterministic parameter init; the module's __init__ zeroes the bias.
    fan_in = input_channels * 2
    bound = 1.0 / jnp.sqrt(fan_in)
    weight = jax.random.uniform(
        kw, (num_classes, fan_in), minval=-bound, maxval=bound, dtype=jnp.float32
    )
    bias = jnp.zeros((num_classes,), dtype=jnp.float32)

    # One-time parameter prep (transpose/split/pad), then the fast forward.
    # On v6e/v7x, pass param_dtype=jnp.bfloat16 here for ~2-3x MXU throughput.
    params = prepare_linear_params(weight, bias)
    out = linear_module_forward(x1, x2, params)
    out = jax.block_until_ready(out)

    # Cross-check against plain-JAX reference of the PyTorch module.
    ref = jnp.concatenate([x1, x2], axis=1) @ weight.T + bias
    assert out.shape == (batch, num_classes)
    assert jnp.allclose(out, ref, atol=1e-5, rtol=1e-5)

    print("KERNEL_OK")
</pallas_src>

<mosaic_0001>
module attributes {stable_mosaic.version = 11 : i64} {
  func.func @_linear_kernel_single_k(%arg0: i32, %arg1: i32, %arg2: memref<8x128xf32, #tpu.memory_space<vmem>>, %arg3: memref<8x128xf32, #tpu.memory_space<vmem>>, %arg4: memref<128x128xf32, #tpu.memory_space<vmem>>, %arg5: memref<128x128xf32, #tpu.memory_space<vmem>>, %arg6: memref<1x128xf32, #tpu.memory_space<vmem>>, %arg7: memref<8x128xf32, #tpu.memory_space<vmem>>) attributes {dimension_semantics = [#tpu.dimension_semantics<parallel>, #tpu.dimension_semantics<parallel>], iteration_bounds = array<i64: 1, 1>, scalar_prefetch = 0 : i64, scratch_operands = 0 : i64, tpu.core_type = #tpu.core_type<tc>, window_params = [{transform_indices = @transform_0, window_bounds = array<i64: 8, 128>}, {transform_indices = @transform_1, window_bounds = array<i64: 8, 128>}, {transform_indices = @transform_2, window_bounds = array<i64: 128, 128>}, {transform_indices = @transform_3, window_bounds = array<i64: 128, 128>}, {transform_indices = @transform_4, window_bounds = array<i64: 1, 128>}, {transform_indices = @transform_5, window_bounds = array<i64: 8, 128>}]} {
    %c0 = arith.constant 0 : index
    %c0_0 = arith.constant 0 : index
    %0 = vector.load %arg2[%c0, %c0_0] : memref<8x128xf32, #tpu.memory_space<vmem>>, vector<8x128xf32>
    %c0_1 = arith.constant 0 : index
    %c0_2 = arith.constant 0 : index
    %1 = vector.load %arg4[%c0_1, %c0_2] : memref<128x128xf32, #tpu.memory_space<vmem>>, vector<128x128xf32>
    %cst = arith.constant dense<0.000000e+00> : vector<8x128xf32>
    %2 = tpu.matmul %0, %1, %cst {dimension_numbers = #tpu.dot_dimension_numbers<[1], [0], [0], [1], [0, 0, 1, 1], [], []>} : vector<8x128xf32>, vector<128x128xf32>, vector<8x128xf32> -> vector<8x128xf32>
    %c0_3 = arith.constant 0 : index
    %c0_4 = arith.constant 0 : index
    %3 = vector.load %arg3[%c0_3, %c0_4] : memref<8x128xf32, #tpu.memory_space<vmem>>, vector<8x128xf32>
    %c0_5 = arith.constant 0 : index
    %c0_6 = arith.constant 0 : index
    %4 = vector.load %arg5[%c0_5, %c0_6] : memref<128x128xf32, #tpu.memory_space<vmem>>, vector<128x128xf32>
    %cst_7 = arith.constant dense<0.000000e+00> : vector<8x128xf32>
    %5 = tpu.matmul %3, %4, %cst_7 {dimension_numbers = #tpu.dot_dimension_numbers<[1], [0], [0], [1], [0, 0, 1, 1], [], []>} : vector<8x128xf32>, vector<128x128xf32>, vector<8x128xf32> -> vector<8x128xf32>
    %6 = arith.addf %2, %5 : vector<8x128xf32>
    %c0_8 = arith.constant 0 : index
    %c0_9 = arith.constant 0 : index
    %7 = vector.load %arg6[%c0_8, %c0_9] : memref<1x128xf32, #tpu.memory_space<vmem>>, vector<1x128xf32>
    %8 = vector.broadcast %7 : vector<1x128xf32> to vector<8x128xf32>
    %9 = arith.addf %6, %8 : vector<8x128xf32>
    %c0_10 = arith.constant 0 : index
    %c0_11 = arith.constant 0 : index
    %10 = vector.load %arg7[%c0_10, %c0_11] : memref<8x128xf32, #tpu.memory_space<vmem>>, vector<8x128xf32>
    tpu.vector_store %arg7[%c0_10, %c0_11], %9 {strides = array<i32>} : memref<8x128xf32, #tpu.memory_space<vmem>>, vector<8x128xf32>,
    return
  }
  func.func @transform_0(%arg0: i32, %arg1: i32) -> (i32, i32) {
    %c0_i32 = arith.constant 0 : i32
    %c0_i32_0 = arith.constant 0 : i32
    return %arg0, %c0_i32 : i32, i32
  }
  func.func @transform_1(%arg0: i32, %arg1: i32) -> (i32, i32) {
    %c0_i32 = arith.constant 0 : i32
    %c0_i32_0 = arith.constant 0 : i32
    return %arg0, %c0_i32 : i32, i32
  }
  func.func @transform_2(%arg0: i32, %arg1: i32) -> (i32, i32) {
    %c0_i32 = arith.constant 0 : i32
    %c0_i32_0 = arith.constant 0 : i32
    return %c0_i32, %arg1 : i32, i32
  }
  func.func @transform_3(%arg0: i32, %arg1: i32) -> (i32, i32) {
    %c0_i32 = arith.constant 0 : i32
    %c0_i32_0 = arith.constant 0 : i32
    return %c0_i32, %arg1 : i32, i32
  }
  func.func @transform_4(%arg0: i32, %arg1: i32) -> (i32, i32) {
    %c0_i32 = arith.constant 0 : i32
    %c0_i32_0 = arith.constant 0 : i32
    return %c0_i32, %arg1 : i32, i32
  }
  func.func @transform_5(%arg0: i32, %arg1: i32) -> (i32, i32) {
    %c0_i32 = arith.constant 0 : i32
    return %arg0, %arg1 : i32, i32
  }
}

</mosaic_0001>

<bundles_post_ra>
// kernel: tpu_custom_call.1
= control target key start
LH: loop header
LB: loop body
LE: loop exit
PB: predicated region body
PF: predicated region fallthrough
CT: control target
= control target key end

     0   :  { %10 = vsyncpa [#allocation3], 0  ;;  %s672_s0 = inlined_call_operand.hbm [shape: f32[8,128], index: 0, kind: input, shape index: {}]   ;;  %s673_s1 = inlined_call_operand.hbm [shape: f32[8,128], index: 1, kind: input, shape index: {}]   ;;  %s674_s2 = inlined_call_operand.hbm [shape: f32[128,128], index: 2, kind: input, shape index: {}]   ;;  %s675_s3 = inlined_call_operand.hbm [shape: f32[128,128], index: 3, kind: input, shape index: {}]   ;;  %s676_s4 = inlined_call_operand.vmem [shape: f32[1,128], index: 4, kind: input, shape index: {}]   ;;  %s677_s5 = inlined_call_operand.hbm [shape: f32[8,128], index: 5, kind: output, shape index: {}]  }
   0x1   :  { %11 = vsyncpa [#allocation6], 0 }
   0x2   :  { %12 = vsyncpa [#allocation9], 0 }
   0x3   :  { %13 = vsyncpa [#allocation4], 0  ;;  %s553_s18 = smov [#allocation5]   ;;  %s554_s20 = smov [#allocation2]  }
   0x4   :  { %s30_s19 = sshll.u32 %s553_s18, 4  ;;  %s20_s21 = sshll.u32 %s554_s20, 4  ;;  %s31_s19 = int_to_ptr.vmem [resolvable:$true] %s30_s19  ;;  %s21_s21 = int_to_ptr.vmem [resolvable:$true] %s20_s21 }
   0x5   :  { %s435_s24 = scalar_lea.hbm %s673_s1, 128 }
   0x6   :  { %p436_p0 = scmp.ne.s32.totalorder %s673_s1, %s435_s24  ;;  %p439_p1 = scmp.lt.u32.totalorder %s435_s24, %s673_s1 }
   0x8   :  { %p441_p2 = pnand %p439_p1, %p436_p0 }
   0xa   :  { %444 = shalt.err (!%p441_p2)
}
   0xb   :  { %s445_s29 = scalar_lea.vmem %s31_s19, 128  ;;  %p450_p4 = scmp.lt.s32.totalorder %s31_s19, %s31_s19 }
   0xc   :  { %p446_p3 = scmp.ne.s32.totalorder %s31_s19, %s445_s29  ;;  %p451_p5 = scmp.lt.s32.totalorder %s445_s29, %s445_s29 }
   0xe   :  { %p452_p6 = por %p451_p5, %p450_p4 }
  0x10   :  { %p453_p7 = pnand %p452_p6, %p446_p3 }
  0x12   :  { %456 = shalt.err (!%p453_p7)
}
  0x13   :  { %33 = dma.hbm_to_vmem [thread:$0]  %s673_s1, 128, %s31_s19, [#allocation6]  }
  0x14   :  { %s457_s9 = scalar_lea.hbm %s672_s0, 128 }
  0x15   :  { %p458_p8 = scmp.ne.s32.totalorder %s672_s0, %s457_s9  ;;  %p461_p9 = scmp.lt.u32.totalorder %s457_s9, %s672_s0 }
  0x17   :  { %p463_p10 = pnand %p461_p9, %p458_p8 }
  0x19   :  { %466 = shalt.err (!%p463_p10)
}
  0x1a   :  { %s467_s14 = scalar_lea.vmem %s21_s21, 128  ;;  %p472_p12 = scmp.lt.s32.totalorder %s21_s21, %s21_s21 }
  0x1b   :  { %p468_p11 = scmp.ne.s32.totalorder %s21_s21, %s467_s14  ;;  %p473_p13 = scmp.lt.s32.totalorder %s467_s14, %s467_s14 }
  0x1d   :  { %p474_p0 = por %p473_p13, %p472_p12 }
  0x1f   :  { %p475_p1 = pnand %p474_p0, %p468_p11 }
  0x21   :  { %478 = shalt.err (!%p475_p1)
}
  0x22   :  { %23 = dma.hbm_to_vmem [thread:$0]  %s672_s0, 128, %s21_s21, [#allocation3]  }
  0x23   :  { %s555_s16 = smov [#allocation7]   ;;  %s479_s20 = scalar_lea.hbm %s674_s2, 2048 }
  0x24   :  { %s39_s17 = sshll.u32 %s555_s16, 4  ;;  %p480_p2 = scmp.ne.s32.totalorder %s674_s2, %s479_s20  ;;  %s40_s17 = int_to_ptr.vmem [resolvable:$true] %s39_s17 }
  0x25   :  { %p483_p3 = scmp.lt.u32.totalorder %s479_s20, %s674_s2 }
  0x27   :  { %p485_p4 = pnand %p483_p3, %p480_p2 }
  0x29   :  { %488 = shalt.err (!%p485_p4)
}
  0x2a   :  { %s489_s26 = scalar_lea.vmem %s40_s17, 2048  ;;  %p494_p6 = scmp.lt.s32.totalorder %s40_s17, %s40_s17 }
  0x2b   :  { %p490_p5 = scmp.ne.s32.totalorder %s40_s17, %s489_s26  ;;  %p495_p7 = scmp.lt.s32.totalorder %s489_s26, %s489_s26 }
  0x2d   :  { %p496_p8 = por %p495_p7, %p494_p6 }
  0x2f   :  { %p497_p9 = pnand %p496_p8, %p490_p5 }
  0x31   :  { %500 = shalt.err (!%p497_p9)
}
  0x32   :  { %s556_s0 = smov 128   ;;  %s557_s21 = smov 8  }
  0x33   :  { %45 = dma.hbm_to_vmem [thread:$0]  %s674_s2, 2048, %s40_s17, [#allocation6], %s556_s0, %s556_s0, %s557_s21  }
  0x34   :  { %s558_s29 = smov [#allocation8]   ;;  %s501_s8 = scalar_lea.hbm %s675_s3, 2048 }
  0x35   :  { %s51_s30 = sshll.u32 %s558_s29, 4  ;;  %p502_p10 = scmp.ne.s32.totalorder %s675_s3, %s501_s8  ;;  %s52_s30 = int_to_ptr.vmem [resolvable:$true] %s51_s30 }
  0x36   :  { %p505_p11 = scmp.lt.u32.totalorder %s501_s8, %s675_s3 }
  0x38   :  { %p507_p12 = pnand %p505_p11, %p502_p10 }
  0x3a   :  { %510 = shalt.err (!%p507_p12)
}
  0x3b   :  { %s511_s13 = scalar_lea.vmem %s52_s30, 2048  ;;  %p516_p0 = scmp.lt.s32.totalorder %s52_s30, %s52_s30 }
  0x3c   :  { %p512_p13 = scmp.ne.s32.totalorder %s52_s30, %s511_s13  ;;  %p517_p1 = scmp.lt.s32.totalorder %s511_s13, %s511_s13 }
  0x3e   :  { %p518_p2 = por %p517_p1, %p516_p0 }
  0x40   :  { %p519_p3 = pnand %p518_p2, %p512_p13 }
  0x42   :  { %522 = shalt.err (!%p519_p3)
}
  0x43   :  { %57 = dma.hbm_to_vmem [thread:$0]  %s675_s3, 2048, %s52_s30, [#allocation9], %s556_s0, %s556_s0, %s557_s21  }
  0x44   :  { %545 = dma.done.wait [#allocation3], 128  }
  0x45   :  { %546 = vsyncadd [#allocation3], 4294967168 }
  0x46   :  { %547 = dma.done.wait [#allocation6], 2176  }
  0x47   :  { %548 = vsyncadd [#allocation6], 4294965120 }
  0x48   :  { %549 = dma.done.wait [#allocation9], 2048  }
  0x49   :  { %550 = vsyncadd [#allocation9], 4294965248  ;;  %v559_v0 = vmov 0.0|0.0   ;;  %vm560_vm0 = vmmov 0   ;;  %v561_v1 = vmov 0.0   ;;  %v90_v2 = vld [vmem:[#allocation8] sm:$0xff] }
  0x4a   :  { %377 = vmatprep.subr.bf16.mxu0 %v559_v0  ;;  %401 = vmatprep.subr.bf16.mxu1 %v559_v0  ;;  %v91_v3 = vld [vmem:[#allocation8 + $0x8] sm:$0xff]  ;;  %v73_v4 = vld [vmem:[#allocation7] sm:$0xff]  ;;  %v92_v7 = vld [vmem:[#allocation8 + $0x10] sm:$0xff]  ;;  %s562_s15 = smov [#allocation10]  }
  0x4b   :  { %339 = vmatprep.mubr.msk.f32.mxu0 %vm560_vm0, %v561_v1  ;;  %374 = vmatprep.mubr.msk.f32.mxu1 %vm560_vm0, %v561_v1  ;;  %v378_v5 = vpack.c.bf16 %v91_v3, %v90_v2  ;;  %v74_v6 = vld [vmem:[#allocation7 + $0x8] sm:$0xff]  ;;  %v93_v8 = vld [vmem:[#allocation8 + $0x18] sm:$0xff]  ;;  %v75_v10 = vld [vmem:[#allocation7 + $0x10] sm:$0xff]  ;;  %s261_s16 = sshll.u32 %s562_s15, 4  ;;  %s262_s16 = int_to_ptr.vmem [resolvable:$true] %s261_s16 }
  0x4c   :  { %v402_v9 = vpack.c.bf16 %v74_v6, %v73_v4  ;;  %v76_v11 = vld [vmem:[#allocation7 + $0x18] sm:$0xff]  ;;  %v381_v12 = vpack.c.bf16 %v93_v8, %v92_v7  ;;  %v94_v14 = vld [vmem:[#allocation8 + $0x20] sm:$0xff]  ;;  %v95_v15 = vld [vmem:[#allocation8 + $0x28] sm:$0xff]  ;;  %s523_s17 = scalar_lea.vmem %s262_s16, 128  ;;  %p528_p5 = scmp.lt.s32.totalorder %s262_s16, %s262_s16 }
  0x4d   :  { %379 = vmatpush3.bf16.msra.mxu0 %v378_v5  ;;  %v405_v13 = vpack.c.bf16 %v76_v11, %v75_v10  ;;  %v77_v16 = vld [vmem:[#allocation7 + $0x20] sm:$0xff]  ;;  %v78_v17 = vld [vmem:[#allocation7 + $0x28] sm:$0xff]  ;;  %v384_v18 = vpack.c.bf16 %v95_v15, %v94_v14  ;;  %v96_v20 = vld [vmem:[#allocation8 + $0x30] sm:$0xff]  ;;  %p524_p4 = scmp.ne.s32.totalorder %s262_s16, %s523_s17  ;;  %p529_p6 = scmp.lt.s32.totalorder %s523_s17, %s523_s17 }
  0x4e   :  { %403 = vmatpush3.bf16.msra.mxu1 %v402_v9  ;;  %380 = vmatprep.subr.bf16.mxu0 %v559_v0  ;;  %v408_v19 = vpack.c.bf16 %v78_v17, %v77_v16  ;;  %v97_v21 = vld [vmem:[#allocation8 + $0x38] sm:$0xff]  ;;  %v79_v22 = vld [vmem:[#allocation7 + $0x30] sm:$0xff]  ;;  %v98_v26 = vld [vmem:[#allocation8 + $0x40] sm:$0xff] }
  0x4f   :  { %404 = vmatprep.subr.bf16.mxu1 %v559_v0  ;;  %v80_v23 = vld [vmem:[#allocation7 + $0x38] sm:$0xff]  ;;  %v387_v24 = vpack.c.bf16 %v97_v21, %v96_v20  ;;  %v99_v27 = vld [vmem:[#allocation8 + $0x48] sm:$0xff]  ;;  %v81_v28 = vld [vmem:[#allocation7 + $0x40] sm:$0xff]  ;;  %p530_p7 = por %p529_p6, %p528_p5 }
  0x50   :  { %v411_v25 = vpack.c.bf16 %v80_v23, %v79_v22  ;;  %v82_v29 = vld [vmem:[#allocation7 + $0x48] sm:$0xff]  ;;  %v390_v30 = vpack.c.bf16 %v99_v27, %v98_v26  ;;  %v100_v32 = vld [vmem:[#allocation8 + $0x50] sm:$0xff]  ;;  %v101_v33 = vld [vmem:[#allocation8 + $0x58] sm:$0xff] }
  0x51   :  { %382 = vmatpush3.bf16.msra.mxu0 %v381_v12  ;;  %v414_v31 = vpack.c.bf16 %v82_v29, %v81_v28  ;;  %v83_v34 = vld [vmem:[#allocation7 + $0x50] sm:$0xff]  ;;  %v84_v35 = vld [vmem:[#allocation7 + $0x58] sm:$0xff]  ;;  %v393_v36 = vpack.c.bf16 %v101_v33, %v100_v32  ;;  %v102_v38 = vld [vmem:[#allocation8 + $0x60] sm:$0xff]  ;;  %p531_p8 = pnand %p530_p7, %p524_p4 }
  0x52   :  { %406 = vmatpush3.bf16.msra.mxu1 %v405_v13  ;;  %383 = vmatprep.subr.bf16.mxu0 %v559_v0  ;;  %v417_v37 = vpack.c.bf16 %v84_v35, %v83_v34  ;;  %v103_v39 = vld [vmem:[#allocation8 + $0x68] sm:$0xff]  ;;  %v85_v40 = vld [vmem:[#allocation7 + $0x60] sm:$0xff]  ;;  %v104_v44 = vld [vmem:[#allocation8 + $0x70] sm:$0xff] }
  0x53   :  { %407 = vmatprep.subr.bf16.mxu1 %v559_v0  ;;  %v86_v41 = vld [vmem:[#allocation7 + $0x68] sm:$0xff]  ;;  %v396_v42 = vpack.c.bf16 %v103_v39, %v102_v38  ;;  %v105_v45 = vld [vmem:[#allocation8 + $0x78] sm:$0xff]  ;;  %v87_v46 = vld [vmem:[#allocation7 + $0x70] sm:$0xff] }
  0x54   :  { %v420_v43 = vpack.c.bf16 %v86_v41, %v85_v40  ;;  %v88_v47 = vld [vmem:[#allocation7 + $0x78] sm:$0xff]  ;;  %v399_v48 = vpack.c.bf16 %v105_v45, %v104_v44  ;;  %v72_v51 = vld [vmem:[#allocation2] sm:$0xff] }
  0x55   :  { %385 = vmatpush3.bf16.msra.mxu0 %v384_v18  ;;  %v423_v49 = vpack.c.bf16 %v88_v47, %v87_v46  ;;  %v89_v50 = vld [vmem:[#allocation5] sm:$0xff]  ;;  %v272_v54 = vld [vmem:[%s676_s4] ss:$0 sm:$0xff] }
  0x56   :  { %409 = vmatpush3.bf16.msra.mxu1 %v408_v19  ;;  %386 = vmatprep.subr.bf16.mxu0 %v559_v0 }
  0x57   :  { %410 = vmatprep.subr.bf16.mxu1 %v559_v0 }
  0x59   :  { %388 = vmatpush3.bf16.msra.mxu0 %v387_v24 }
  0x5a   :  { %412 = vmatpush3.bf16.msra.mxu1 %v411_v25  ;;  %389 = vmatprep.subr.bf16.mxu0 %v559_v0 }
  0x5b   :  { %413 = vmatprep.subr.bf16.mxu1 %v559_v0 }
  0x5d   :  { %391 = vmatpush3.bf16.msra.mxu0 %v390_v30 }
  0x5e   :  { %415 = vmatpush3.bf16.msra.mxu1 %v414_v31  ;;  %392 = vmatprep.subr.bf16.mxu0 %v559_v0 }
  0x5f   :  { %416 = vmatprep.subr.bf16.mxu1 %v559_v0 }
  0x61   :  { %394 = vmatpush3.bf16.msra.mxu0 %v393_v36 }
  0x62   :  { %418 = vmatpush3.bf16.msra.mxu1 %v417_v37  ;;  %395 = vmatprep.subr.bf16.mxu0 %v559_v0 }
  0x63   :  { %419 = vmatprep.subr.bf16.mxu1 %v559_v0 }
  0x65   :  { %397 = vmatpush3.bf16.msra.mxu0 %v396_v42 }
  0x66   :  { %421 = vmatpush3.bf16.msra.mxu1 %v420_v43  ;;  %398 = vmatprep.subr.bf16.mxu0 %v559_v0 }
  0x67   :  { %422 = vmatprep.subr.bf16.mxu1 %v559_v0 }
  0x69   :  { %400 = vmatpush3.bf16.msra.mxu0 %v399_v48 }
  0x6a   :  { %424 = vmatpush3.bf16.msra.mxu1 %v423_v49 }
  0x6c   :  { %340 = vmatmul.mubr.f32.vlgmr.msra.gmra.mrb[0].mxu0 %v89_v50 }
  0x6d   :  { %375 = vmatmul.mubr.f32.vlgmr.msra.gmra.mrb[0].mxu1 %v72_v51 }
 0x13f   :  { %v172_v52 = vpop.f32.mrb[0].mxu0 }
 0x140   :  { %v242_v53 = vpop.f32.mrb[0].mxu1  ;;  %v341_v55 = vpop.f32.mrb[1].mxu0 }
 0x141   :  { %v243_v56 = vadd.f32 %v242_v53, %v172_v52  ;;  %v376_v57 = vpop.f32.mrb[1].mxu1 }
 0x143   :  { %v253_v58 = vadd.f32 %v272_v54, %v243_v56 }
 0x145   :  { %254 = vst [vmem:[#allocation10] sm:$0xff] %v253_v58 }
 0x146   :  { %534 = shalt.err (!%p531_p8)
}
 0x147   :  { %s535_s20 = scalar_lea.hbm %s677_s5, 128 }
 0x148   :  { %p536_p9 = scmp.ne.s32.totalorder %s677_s5, %s535_s20  ;;  %p539_p10 = scmp.lt.u32.totalorder %s535_s20, %s677_s5 }
 0x14a   :  { %p541_p11 = pnand %p539_p10, %p536_p9 }
 0x14c   :  { %544 = shalt.err (!%p541_p11)
}
 0x14d   :  { %264 = dma.vmem_to_hbm [thread:$0]  %s262_s16, 128, %s677_s5, [#allocation4]  }
 0x14e   :  { %551 = dma.done.wait [#allocation4], 128  }
 0x14f   :  { %552 = vsyncadd [#allocation4], 4294967168 }
 0x150   :  { %268 = vsyncpa [#allocation3], 1 }
 0x151   :  { %269 = vsyncpa [#allocation6], 1 }
 0x152   :  { %270 = vsyncpa [#allocation9], 1 }
 0x153   :  { %271 = vsyncpa [#allocation4], 1 }

</bundles_post_ra>
